<compile_context>
chip_gen: v5e
topology: v5e:2x2
jax: 0.10.0
libtpu: 0.0.40
codegen_flags: <defaults>
</compile_context>

<pallas_src>
import functools
import math

import jax
import jax.numpy as jnp
from jax.experimental import pallas as pl
from jax.experimental.pallas import tpu as pltpu

_EPS = 1e-12          # torch.nn.functional.normalize default
_EPS_SQ = _EPS * _EPS


def _round_up(x, m):
    return (x + m - 1) // m * m


# ---------------------------------------------------------------------------
# Kernel
# ---------------------------------------------------------------------------
def _arc_subcenter_kernel(f_ref, w_ref, o_ref, *, k, tile_out):
    # f_ref : [TILE_B, D_pad]          pre-normalized bf16 features
    # w_ref : [1, D_pad, k*TILE_OUT]   pre-normalized bf16 weights (K-major)
    # o_ref : [TILE_B, TILE_OUT]       f32 max-over-sub-centers cosine
    fn = f_ref[...]
    wt = w_ref[0]                                  # [D_pad, k*TILE_OUT]

    # One fused MXU pass over all k sub-centers.  RHS is K-major so the
    # contraction is (lhs dim 1, rhs dim 0): no per-block XLU transpose.
    res = jax.lax.dot_general(
        fn, wt, dimension_numbers=(((1,), (0,)), ((), ())),
        preferred_element_type=jnp.float32)        # [TILE_B, k*TILE_OUT]

    # Max over the k lane-aligned slices (tile_out is a 128-multiple).
    acc = res[:, :tile_out]
    for j in range(1, k):                          # k is tiny and static (3)
        acc = jnp.maximum(acc, res[:, j * tile_out:(j + 1) * tile_out])

    o_ref[...] = acc.astype(o_ref.dtype)


# ---------------------------------------------------------------------------
# One-time weight preparation (cache across forward calls in a real model:
# it depends only on the parameter, never on the batch).
# ---------------------------------------------------------------------------
def prepare_weight(weight, out_features, k, tile_out, d_pad):
    """weight: [out_features*k, D] (PyTorch layout; row c*k + j = class c,
    sub-center j).  Returns bf16 [n_out_tiles, D_pad, k*tile_out] with
    unit-norm sub-center vectors, K-major, one contiguous slab per OUT tile."""
    D = weight.shape[1]
    w = weight.astype(jnp.float32).reshape(out_features, k, D)
    inv = jax.lax.rsqrt(
        jnp.maximum(jnp.sum(w * w, axis=-1, keepdims=True), _EPS_SQ))
    wn = w * inv                                               # [out, k, D]

    out_pad = _round_up(out_features, tile_out)
    wn = jnp.pad(wn, ((0, out_pad - out_features), (0, 0), (0, d_pad - D)))

    n_tiles = out_pad // tile_out
    wn = wn.reshape(n_tiles, tile_out, k, d_pad)
    wn = wn.transpose(0, 3, 2, 1)                  # [n_tiles, D_pad, k, tile_out]
    wn = wn.reshape(n_tiles, d_pad, k * tile_out)  # last-dim idx = j*tile_out + c
    return wn.astype(jnp.bfloat16)


def _prepare_features(features, b_pad, d_pad):
    """Normalize once (matches F.normalize: x / max(||x||, eps)), cast bf16, pad."""
    B, D = features.shape
    f = features.astype(jnp.float32)
    inv = jax.lax.rsqrt(
        jnp.maximum(jnp.sum(f * f, axis=-1, keepdims=True), _EPS_SQ))
    fn = (f * inv).astype(jnp.bfloat16)
    return jnp.pad(fn, ((0, b_pad - B), (0, d_pad - D)))


# ---------------------------------------------------------------------------
# Tile selection (generation-agnostic, VMEM-budget aware)
# ---------------------------------------------------------------------------
def _fit_tiles(B, d_pad, out_features, k, tile_b_max, tile_out_max,
               vmem_budget_bytes):
    tile_out = min(tile_out_max, _round_up(out_features, 128))
    tile_b = min(tile_b_max, _round_up(B, 8))

    def need(tb, to):
        return (2 * d_pad * k * to * 2      # weight blocks, bf16, double-buffered
                + 2 * tb * d_pad * 2        # feature block, bf16, double-buffered
                + 2 * tb * to * 4           # output block, f32, double-buffered
                + tb * k * to * 4)          # fused-matmul f32 intermediate

    while need(tile_b, tile_out) > vmem_budget_bytes and tile_out > 128:
        tile_out = max(128, _round_up(tile_out // 2, 128))
    while need(tile_b, tile_out) > vmem_budget_bytes and tile_b > 8:
        tile_b = max(8, _round_up(tile_b // 2, 8))
    return tile_b, tile_out


# ---------------------------------------------------------------------------
# Wrapper
# ---------------------------------------------------------------------------
def arc_margin_subcenter(features, weight, out_features, k,
                         tile_b_max=512, tile_out_max=1024,
                         vmem_budget_bytes=24 * 1024 * 1024):
    """features: [B, in_features]; weight: [out_features*k, in_features]."""
    B, D = features.shape
    assert weight.shape == (out_features * k, D)

    d_pad = _round_up(D, 128)
    tile_b, tile_out = _fit_tiles(B, d_pad, out_features, k,
                                  tile_b_max, tile_out_max, vmem_budget_bytes)
    b_pad = _round_up(B, tile_b)
    out_pad = _round_up(out_features, tile_out)

    # One-time relayout/normalization of the parameter (cache in production).
    w_prep = prepare_weight(weight, out_features, k, tile_out, d_pad)
    f_prep = _prepare_features(features, b_pad, d_pad)

    kernel = functools.partial(_arc_subcenter_kernel, k=k, tile_out=tile_out)

    out = pl.pallas_call(
        kernel,
        out_shape=jax.ShapeDtypeStruct((b_pad, out_pad), jnp.float32),
        grid_spec=pltpu.PrefetchScalarGridSpec(
            num_scalar_prefetch=0,
            grid=(b_pad // tile_b, out_pad // tile_out),
            in_specs=[
                # features: block index invariant along OUT -> fetched once
                # per B-tile, resident while the weight streams.
                pl.BlockSpec((tile_b, d_pad), lambda b, o: (b, 0)),
                # weight: one contiguous [D_pad, k*tile_out] slab per OUT tile.
                pl.BlockSpec((1, d_pad, k * tile_out), lambda b, o: (o, 0, 0)),
            ],
            out_specs=pl.BlockSpec((tile_b, tile_out), lambda b, o: (b, o)),
        ),
        compiler_params=pltpu.CompilerParams(
            # No carried state on either axis -> both parallel (v7x megacore
            # can shard OUT even when B is a single tile).
            dimension_semantics=("parallel", "parallel"),
            # Explicit limit so the budget above also fits v5e's 16 MiB
            # default scoped VMEM; 48 MiB is safe on v5e/v6e/v7x.
            vmem_limit_bytes=48 * 1024 * 1024),
    )(f_prep, w_prep)

    return out[:B, :out_features]


# ---------------------------------------------------------------------------
# Reference + tests
# ---------------------------------------------------------------------------
def _reference(features, weight, out_features, k):
    f = features / jnp.maximum(
        jnp.linalg.norm(features, axis=-1, keepdims=True), _EPS)
    w = weight / jnp.maximum(
        jnp.linalg.norm(weight, axis=-1, keepdims=True), _EPS)
    cos_all = f @ w.T
    return jnp.max(cos_all.reshape(-1, out_features, k), axis=2)


def _run_case(key, B, in_features, out_features, k, **tile_kwargs):
    kf, kw = jax.random.split(key)
    features = jax.random.normal(kf, (B, in_features), dtype=jnp.float32)
    # Deterministic init matching reset_parameters(): uniform(-stdv, stdv).
    stdv = 1.0 / math.sqrt(in_features)
    weight = jax.random.uniform(
        kw, (out_features * k, in_features),
        minval=-stdv, maxval=stdv, dtype=jnp.float32)

    out = arc_margin_subcenter(features, weight, out_features, k, **tile_kwargs)
    out = jax.block_until_ready(out)

    ref = _reference(features, weight, out_features, k)
    assert out.shape == (B, out_features)
    # bf16 matmul operands -> loosen tolerance vs the pure-f32 reference.
    assert jnp.allclose(out, ref, atol=2e-2, rtol=0.0), (
        float(jnp.max(jnp.abs(out - ref))))


if __name__ == "__main__":
    key = jax.random.PRNGKey(0)
    k1, k2 = jax.random.split(key)

    # Small shapes consistent with the module: features [B, in_features].
    _run_case(k1, B=4, in_features=32, out_features=8, k=3)

    # Multi-tile grid (B padding, 3 B-tiles x 2 OUT-tiles) with small tile
    # caps so it stays tiny but exercises streaming and the fused max.
    _run_case(k2, B=20, in_features=64, out_features=200, k=3,
              tile_b_max=8, tile_out_max=128)

    print("KERNEL_OK")
</pallas_src>

<mosaic_0001>
module attributes {stable_mosaic.version = 11 : i64} {
  func.func @_arc_subcenter_kernel(%arg0: i32, %arg1: i32, %arg2: memref<8x128xbf16, #tpu.memory_space<vmem>>, %arg3: memref<1x128x384xbf16, #tpu.memory_space<vmem>>, %arg4: memref<8x128xf32, #tpu.memory_space<vmem>>) attributes {dimension_semantics = [#tpu.dimension_semantics<parallel>, #tpu.dimension_semantics<parallel>], iteration_bounds = array<i64: 1, 1>, scalar_prefetch = 0 : i64, scratch_operands = 0 : i64, tpu.core_type = #tpu.core_type<tc>, window_params = [{transform_indices = @transform_0, window_bounds = array<i64: 8, 128>}, {transform_indices = @transform_1, window_bounds = array<i64: 1, 128, 384>}, {transform_indices = @transform_2, window_bounds = array<i64: 8, 128>}]} {
    %c0 = arith.constant 0 : index
    %c0_0 = arith.constant 0 : index
    %0 = vector.load %arg2[%c0, %c0_0] : memref<8x128xbf16, #tpu.memory_space<vmem>>, vector<8x128xbf16>
    %c0_1 = arith.constant 0 : index
    %c0_2 = arith.constant 0 : index
    %c0_3 = arith.constant 0 : index
    %1 = vector.load %arg3[%c0_1, %c0_2, %c0_3] : memref<1x128x384xbf16, #tpu.memory_space<vmem>>, vector<1x128x384xbf16>
    %2 = vector.shape_cast %1 : vector<1x128x384xbf16> to vector<128x384xbf16>
    %cst = arith.constant dense<0.000000e+00> : vector<8x384xf32>
    %3 = tpu.matmul %0, %2, %cst {dimension_numbers = #tpu.dot_dimension_numbers<[1], [0], [0], [1], [0, 0, 1, 1], [], []>} : vector<8x128xbf16>, vector<128x384xbf16>, vector<8x384xf32> -> vector<8x384xf32>
    %4 = vector.extract_strided_slice %3 {offsets = [0, 0], sizes = [8, 128], strides = [1, 1]} : vector<8x384xf32> to vector<8x128xf32>
    %5 = vector.extract_strided_slice %3 {offsets = [0, 128], sizes = [8, 128], strides = [1, 1]} : vector<8x384xf32> to vector<8x128xf32>
    %6 = arith.maximumf %4, %5 : vector<8x128xf32>
    %7 = vector.extract_strided_slice %3 {offsets = [0, 256], sizes = [8, 128], strides = [1, 1]} : vector<8x384xf32> to vector<8x128xf32>
    %8 = arith.maximumf %6, %7 : vector<8x128xf32>
    %c0_4 = arith.constant 0 : index
    %c0_5 = arith.constant 0 : index
    %9 = vector.load %arg4[%c0_4, %c0_5] : memref<8x128xf32, #tpu.memory_space<vmem>>, vector<8x128xf32>
    tpu.vector_store %arg4[%c0_4, %c0_5], %8 {strides = array<i32>} : memref<8x128xf32, #tpu.memory_space<vmem>>, vector<8x128xf32>,
    return
  }
  func.func @transform_0(%arg0: i32, %arg1: i32) -> (i32, i32) {
    %c0_i32 = arith.constant 0 : i32
    %c0_i32_0 = arith.constant 0 : i32
    return %arg0, %c0_i32 : i32, i32
  }
  func.func @transform_1(%arg0: i32, %arg1: i32) -> (i32, i32, i32) {
    %c0_i32 = arith.constant 0 : i32
    %c0_i32_0 = arith.constant 0 : i32
    %c0_i32_1 = arith.constant 0 : i32
    return %arg1, %c0_i32, %c0_i32_0 : i32, i32, i32
  }
  func.func @transform_2(%arg0: i32, %arg1: i32) -> (i32, i32) {
    %c0_i32 = arith.constant 0 : i32
    return %arg0, %arg1 : i32, i32
  }
}

</mosaic_0001>

<bundles_post_ra>
// kernel: tpu_custom_call.1
= control target key start
LH: loop header
LB: loop body
LE: loop exit
PB: predicated region body
PF: predicated region fallthrough
CT: control target
= control target key end

     0   :  { %7 = vsyncpa [#allocation3], 0  ;;  %s495_s0 = inlined_call_operand.hbm [shape: bf16[8,128], index: 0, kind: input, shape index: {}]   ;;  %s496_s1 = inlined_call_operand.hbm [shape: bf16[1,128,384], index: 1, kind: input, shape index: {}]   ;;  %s497_s2 = inlined_call_operand.hbm [shape: f32[8,128], index: 2, kind: output, shape index: {}]  }
   0x1   :  { %8 = vsyncpa [#allocation6], 0 }
   0x2   :  { %9 = vsyncpa [#allocation4], 0  ;;  %s15_s11 = sshll.u32 %s495_s0, 4  ;;  %s466_s12 = smov [#allocation2]   ;;  %s16_s11 = int_to_ptr.hbm [resolvable:$true] %s15_s11 }
   0x3   :  { %s17_s13 = sshll.u32 %s466_s12, 4  ;;  %s25_s16 = sshll.u32 %s496_s1, 4  ;;  %s18_s13 = int_to_ptr.vmem [resolvable:$true] %s17_s13  ;;  %s26_s16 = int_to_ptr.hbm [resolvable:$true] %s25_s16 }
   0x4   :  { %20 = dma.hbm_to_vmem [thread:$0]  %s16_s11, 64, %s18_s13, [#allocation3]  }
   0x5   :  { %s467_s17 = smov [#allocation5]   ;;  %s468_s19 = smov 192  }
   0x6   :  { %s27_s18 = sshll.u32 %s467_s17, 4  ;;  %s469_s20 = smov 12   ;;  %s28_s18 = int_to_ptr.vmem [resolvable:$true] %s27_s18 }
   0x7   :  { %33 = dma.hbm_to_vmem [thread:$0]  %s26_s16, 3072, %s28_s18, [#allocation6], %s468_s19, %s468_s19, %s469_s20  }
   0x8   :  { %460 = dma.done.wait [#allocation3], 64  }
   0x9   :  { %461 = vsyncadd [#allocation3], 4294967232 }
   0xa   :  { %462 = dma.done.wait [#allocation6], 3072  }
   0xb   :  { %463 = vsyncadd [#allocation6], 4294964224  ;;  %v349_v0 = vld [vmem:[#allocation5 + $0xa8] sm:$0xf]  ;;  %v381_v1 = vld [vmem:[#allocation5 + $0xb0] sm:$0xf0] }
   0xc   :  { %v380_v2 = vld [vmem:[#allocation5 + $0xac] sm:$0xf]  ;;  %v350_v3 = vor.u32 %v381_v1, %v349_v0  ;;  %v351_v4 = vld [vmem:[#allocation5 + $0xb4] sm:$0xf0]  ;;  %v357_v5 = vld [vmem:[#allocation5 + $0xb0] sm:$0xf] }
   0xd   :  { %v382_v6 = vld [vmem:[#allocation5 + $0xb8] sm:$0xf0]  ;;  %v354_v7 = vor.u32 %v380_v2, %v351_v4  ;;  %v337_v9 = vld [vmem:[#allocation5 + $0x90] sm:$0xf]  ;;  %v377_v11 = vld [vmem:[#allocation5 + $0x94] sm:$0xf] }
   0xe   :  { %v358_v8 = vor.u32 %v382_v6, %v357_v5  ;;  %v378_v10 = vld [vmem:[#allocation5 + $0x98] sm:$0xf0]  ;;  %203 = vmatpush.bf16.msra.mxu0 %v350_v3  ;;  %v339_v13 = vld [vmem:[#allocation5 + $0x9c] sm:$0xf0]  ;;  %v345_v14 = vld [vmem:[#allocation5 + $0x98] sm:$0xf] }
   0xf   :  { %v338_v12 = vor.u32 %v378_v10, %v337_v9  ;;  %v379_v15 = vld [vmem:[#allocation5 + $0xa0] sm:$0xf0]  ;;  %216 = vmatpush.bf16.msra.mxu1 %v354_v7  ;;  %v342_v16 = vor.u32 %v377_v11, %v339_v13  ;;  %v325_v18 = vld [vmem:[#allocation5 + $0x78] sm:$0xf]  ;;  %v374_v20 = vld [vmem:[#allocation5 + $0x7c] sm:$0xf] }
  0x10   :  { %229 = vmatpush.bf16.msra.mxu2 %v358_v8  ;;  %v346_v17 = vor.u32 %v379_v15, %v345_v14  ;;  %v375_v19 = vld [vmem:[#allocation5 + $0x80] sm:$0xf0]  ;;  %v327_v21 = vld [vmem:[#allocation5 + $0x84] sm:$0xf0]  ;;  %v333_v22 = vld [vmem:[#allocation5 + $0x80] sm:$0xf] }
  0x11   :  { %v376_v23 = vld [vmem:[#allocation5 + $0x88] sm:$0xf0]  ;;  %v326_v24 = vor.u32 %v375_v19, %v325_v18  ;;  %v330_v25 = vor.u32 %v374_v20, %v327_v21  ;;  %v313_v27 = vld [vmem:[#allocation5 + $0x60] sm:$0xf]  ;;  %v371_v29 = vld [vmem:[#allocation5 + $0x64] sm:$0xf] }
  0x12   :  { %204 = vmatpush.bf16.msra.mxu0 %v338_v12  ;;  %v334_v26 = vor.u32 %v376_v23, %v333_v22  ;;  %v372_v28 = vld [vmem:[#allocation5 + $0x68] sm:$0xf0]  ;;  %v315_v30 = vld [vmem:[#allocation5 + $0x6c] sm:$0xf0]  ;;  %v321_v31 = vld [vmem:[#allocation5 + $0x68] sm:$0xf] }
  0x13   :  { %217 = vmatpush.bf16.msra.mxu1 %v342_v16  ;;  %v373_v32 = vld [vmem:[#allocation5 + $0x70] sm:$0xf0]  ;;  %v314_v33 = vor.u32 %v372_v28, %v313_v27  ;;  %v318_v34 = vor.u32 %v371_v29, %v315_v30  ;;  %v301_v36 = vld [vmem:[#allocation5 + $0x48] sm:$0xf]  ;;  %v368_v38 = vld [vmem:[#allocation5 + $0x4c] sm:$0xf] }
  0x14   :  { %230 = vmatpush.bf16.msra.mxu2 %v346_v17  ;;  %v322_v35 = vor.u32 %v373_v32, %v321_v31  ;;  %v369_v37 = vld [vmem:[#allocation5 + $0x50] sm:$0xf0]  ;;  %v303_v39 = vld [vmem:[#allocation5 + $0x54] sm:$0xf0]  ;;  %v309_v40 = vld [vmem:[#allocation5 + $0x50] sm:$0xf] }
  0x15   :  { %v370_v41 = vld [vmem:[#allocation5 + $0x58] sm:$0xf0]  ;;  %v302_v42 = vor.u32 %v369_v37, %v301_v36  ;;  %v306_v43 = vor.u32 %v368_v38, %v303_v39  ;;  %v289_v45 = vld [vmem:[#allocation5 + $0x30] sm:$0xf]  ;;  %v365_v47 = vld [vmem:[#allocation5 + $0x34] sm:$0xf] }
  0x16   :  { %205 = vmatpush.bf16.msra.mxu0 %v326_v24  ;;  %v310_v44 = vor.u32 %v370_v41, %v309_v40  ;;  %v366_v46 = vld [vmem:[#allocation5 + $0x38] sm:$0xf0]  ;;  %v291_v48 = vld [vmem:[#allocation5 + $0x3c] sm:$0xf0]  ;;  %v297_v49 = vld [vmem:[#allocation5 + $0x38] sm:$0xf] }
  0x17   :  { %218 = vmatpush.bf16.msra.mxu1 %v330_v25  ;;  %v367_v50 = vld [vmem:[#allocation5 + $0x40] sm:$0xf0]  ;;  %v290_v51 = vor.u32 %v366_v46, %v289_v45  ;;  %v294_v52 = vor.u32 %v365_v47, %v291_v48  ;;  %v277_v54 = vld [vmem:[#allocation5 + $0x18] sm:$0xf]  ;;  %v362_v56 = vld [vmem:[#allocation5 + $0x1c] sm:$0xf] }
  0x18   :  { %231 = vmatpush.bf16.msra.mxu2 %v334_v26  ;;  %v298_v53 = vor.u32 %v367_v50, %v297_v49  ;;  %v363_v55 = vld [vmem:[#allocation5 + $0x20] sm:$0xf0]  ;;  %v279_v57 = vld [vmem:[#allocation5 + $0x24] sm:$0xf0]  ;;  %v285_v58 = vld [vmem:[#allocation5 + $0x20] sm:$0xf] }
  0x19   :  { %v364_v59 = vld [vmem:[#allocation5 + $0x28] sm:$0xf0]  ;;  %v278_v60 = vor.u32 %v363_v55, %v277_v54  ;;  %v282_v61 = vor.u32 %v362_v56, %v279_v57  ;;  %v265_v63 = vld [vmem:[#allocation5] sm:$0xf]  ;;  %v359_v1 = vld [vmem:[#allocation5 + $0x4] sm:$0xf] }
  0x1a   :  { %206 = vmatpush.bf16.msra.mxu0 %v314_v33  ;;  %v286_v62 = vor.u32 %v364_v59, %v285_v58  ;;  %v360_v0 = vld [vmem:[#allocation5 + $0x8] sm:$0xf0]  ;;  %v267_v2 = vld [vmem:[#allocation5 + $0xc] sm:$0xf0]  ;;  %v273_v3 = vld [vmem:[#allocation5 + $0x8] sm:$0xf] }
  0x1b   :  { %219 = vmatpush.bf16.msra.mxu1 %v318_v34  ;;  %v361_v4 = vld [vmem:[#allocation5 + $0x10] sm:$0xf0]  ;;  %v266_v5 = vor.u32 %v360_v0, %v265_v63  ;;  %v270_v6 = vor.u32 %v359_v1, %v267_v2  ;;  %v42_v8 = vld [vmem:[#allocation2] sm:$0xf]  ;;  %s470_s0 = smov [#allocation7]   ;;  %s252_s23 = sshll.u32 %s497_s2, 4  ;;  %s253_s23 = int_to_ptr.hbm [resolvable:$true] %s252_s23 }
  0x1c   :  { %232 = vmatpush.bf16.msra.mxu2 %v322_v35  ;;  %v274_v7 = vor.u32 %v361_v4, %v273_v3  ;;  %s250_s1 = sshll.u32 %s470_s0, 4  ;;  %s251_s1 = int_to_ptr.vmem [resolvable:$true] %s250_s1 }
  0x1e   :  { %207 = vmatpush.bf16.msra.mxu0 %v302_v42 }
  0x1f   :  { %220 = vmatpush.bf16.msra.mxu1 %v306_v43 }
  0x20   :  { %233 = vmatpush.bf16.msra.mxu2 %v310_v44 }
  0x22   :  { %208 = vmatpush.bf16.msra.mxu0 %v290_v51 }
  0x23   :  { %221 = vmatpush.bf16.msra.mxu1 %v294_v52 }
  0x24   :  { %234 = vmatpush.bf16.msra.mxu2 %v298_v53 }
  0x26   :  { %209 = vmatpush.bf16.msra.mxu0 %v278_v60 }
  0x27   :  { %222 = vmatpush.bf16.msra.mxu1 %v282_v61 }
  0x28   :  { %235 = vmatpush.bf16.msra.mxu2 %v286_v62 }
  0x2a   :  { %210 = vmatpush.bf16.msra.mxu0 %v266_v5 }
  0x2b   :  { %223 = vmatpush.bf16.msra.mxu1 %v270_v6 }
  0x2c   :  { %236 = vmatpush.bf16.msra.mxu2 %v274_v7 }
  0x2d   :  { %211 = vmatmul.bf16.vlgmr.msra.gmra.mxu0 %v42_v8 }
  0x2e   :  { %224 = vmatmul.bf16.vlgmr.msra.gmra.mxu1 %v42_v8 }
  0x2f   :  { %237 = vmatmul.bf16.vlgmr.msra.gmra.mxu2 %v42_v8 }
  0xaa   :  { %v212_v9 = vpop.f32.mrf.mxu0 }
  0xab   :  { %v225_v10 = vpop.f32.mrf.mxu1 }
  0xac   :  { %v242_v11 = vmax.f32 %v212_v9, %v225_v10 }
  0xb2   :  { %v238_v12 = vpop.f32.mrf.mxu2  ;;  %v214_v14 = vpop.f32.mrf.mxu0 }
  0xb3   :  { %v243_v13 = vmax.f32 %v242_v11, %v238_v12  ;;  %v227_v15 = vpop.f32.mrf.mxu1 }
  0xb5   :  { %244 = vst [vmem:[#allocation7] sm:$0xff] %v243_v13 }
  0xb6   :  { %255 = dma.vmem_to_hbm [thread:$0]  %s251_s1, 128, %s253_s23, [#allocation4]  }
  0xba   :  { %v240_v16 = vpop.f32.mrf.mxu2 }
  0xbb   :  { %464 = dma.done.wait [#allocation4], 128  }
  0xbc   :  { %465 = vsyncadd [#allocation4], 4294967168 }
  0xbd   :  { %260 = vsyncpa [#allocation3], 1 }
  0xbe   :  { %261 = vsyncpa [#allocation6], 1 }
  0xbf   :  { %262 = vsyncpa [#allocation4], 1 }

</bundles_post_ra>
